<compile_context>
chip_gen: v7x
topology: tpu7x:2x2x1
jax: 0.10.0
libtpu: 0.0.40
codegen_flags: <defaults>
</compile_context>

<pallas_src>
import functools

import jax
import jax.numpy as jnp
from jax.experimental import pallas as pl
from jax.experimental.pallas import tpu as pltpu


# ------------------------------- kernels -----------------------------------


def _se_kernel(x_ref, w0t_ref, b0_ref, w1t_ref, b1_ref, o_ref, *, inv_hw):
    """Fused squeeze / excite / scale on one (TB, C_pad, HW_pad) block."""
    x = x_ref[...]                                               # (TB, Cp, HWp), input dtype

    # squeeze: global average pool over the (lane) spatial axis, f32 accumulation.
    # Padded lanes are zero, so dividing by the TRUE H*W (inv_hw) is exact.
    pooled = jnp.sum(x, axis=-1, dtype=jnp.float32) * inv_hw     # (TB, Cp)

    # excite layer 0: 1x1 conv C -> C/r, ReLU (weights pre-cast to f32 wrapper-side).
    h = jnp.dot(pooled, w0t_ref[...], preferred_element_type=jnp.float32) + b0_ref[...]
    h = jnp.maximum(h, 0.0)                                      # (TB, Cr)

    # excite layer 1: 1x1 conv C/r -> C, hard-sigmoid.
    z = jnp.dot(h, w1t_ref[...], preferred_element_type=jnp.float32) + b1_ref[...]
    s = jnp.minimum(jnp.maximum(z + 3.0, 0.0), 6.0) * (1.0 / 6.0)  # (TB, Cp)

    # scale: broadcast the gate over spatial lanes; multiply in the input dtype
    # (deliberate choice; exact for f32, matches low-precision module behavior).
    o_ref[...] = (x * s.astype(x.dtype)[:, :, None]).astype(o_ref.dtype)


def _gate_kernel(x_ref, s_ref, o_ref):
    """Gating-only kernel for the spatially tiled fallback path."""
    o_ref[...] = (x_ref[...] * s_ref[...].astype(x_ref.dtype)).astype(o_ref.dtype)


# ------------------------------ tiling logic --------------------------------


def _round_up(n, m):
    return ((n + m - 1) // m) * m


def _vmem_budgets():
    """Return (per-buffer block budget, vmem_limit_bytes), generation-aware."""
    try:
        cap = pltpu.get_tpu_info().vmem_capacity_bytes
    except Exception:
        cap = 64 * 1024 * 1024  # conservative: assume v7x-sized VMEM
    if cap <= 64 * 1024 * 1024:                     # v7x (64 MiB physical)
        return 6 * 1024 * 1024, 48 * 1024 * 1024
    return 8 * 1024 * 1024, 64 * 1024 * 1024        # v5e / v6e (128 MiB physical)


def _pick_batch_tile(B, bytes_per_batch, budget_bytes):
    """Largest divisor of B whose block fits the budget, preferring >=4 (then
    >=2) grid steps and an even step count (v7x megacore).  Returns None if a
    single batch element does not fit (caller must use the fallback path)."""
    fitting = [d for d in range(1, B + 1)
               if B % d == 0 and d * bytes_per_batch <= budget_bytes]
    if not fitting:
        return None
    for min_steps in (4, 2, 1):
        cands = [d for d in fitting if B // d >= min_steps]
        if not cands:
            continue
        even = [d for d in cands if (B // d) % 2 == 0]
        return max(even if even else cands)
    return max(fitting)


# ------------------------------ pallas calls ---------------------------------


def _se_fused(x_pad, w0t, b0_row, w1t, b1_row, *, TB, hw_true, vmem_limit):
    B, C_pad, HW_pad = x_pad.shape
    Cr = w0t.shape[1]
    itemsize = jnp.dtype(x_pad.dtype).itemsize
    grid = (B // TB,)

    weight_bytes = 4 * (w0t.size + w1t.size + b0_row.size + b1_row.size)
    cost = pl.CostEstimate(
        flops=int(B * C_pad * HW_pad            # pooling adds
                  + 2 * 2 * B * C_pad * Cr      # two tiny matmuls
                  + B * C_pad * HW_pad),        # gating multiply
        transcendentals=0,
        bytes_accessed=int(2 * B * C_pad * HW_pad * itemsize + weight_bytes),
    )

    kernel = functools.partial(_se_kernel, inv_hw=1.0 / float(hw_true))
    return pl.pallas_call(
        kernel,
        out_shape=jax.ShapeDtypeStruct((B, C_pad, HW_pad), x_pad.dtype),
        grid_spec=pltpu.PrefetchScalarGridSpec(
            num_scalar_prefetch=0,
            grid=grid,
            in_specs=[
                pl.BlockSpec((TB, C_pad, HW_pad), lambda b: (b, 0, 0)),  # x block
                pl.BlockSpec((C_pad, Cr), lambda b: (0, 0)),             # w0^T
                pl.BlockSpec((1, Cr), lambda b: (0, 0)),                 # b0
                pl.BlockSpec((Cr, C_pad), lambda b: (0, 0)),             # w1^T
                pl.BlockSpec((1, C_pad), lambda b: (0, 0)),              # b1
            ],
            out_specs=pl.BlockSpec((TB, C_pad, HW_pad), lambda b: (b, 0, 0)),
        ),
        compiler_params=pltpu.CompilerParams(
            dimension_semantics=("parallel",),
            vmem_limit_bytes=vmem_limit,
        ),
        cost_estimate=cost,
    )(x_pad, w0t, b0_row, w1t, b1_row)


def _se_split(x_flat, x_pad, w0t, b0_row, w1t, b1_row, *, budget_bytes, vmem_limit):
    """Fallback: gate in plain JAX (tiny), gating multiply in a tiled kernel."""
    B, C_pad, HW_pad = x_pad.shape
    C = x_flat.shape[1]
    itemsize = jnp.dtype(x_pad.dtype).itemsize

    # Squeeze + excite on the TRUE (unpadded) spatial extent; negligible cost.
    pooled = jnp.mean(x_flat.astype(jnp.float32), axis=-1)              # (B, C)
    pooled = jnp.pad(pooled, ((0, 0), (0, C_pad - C)))
    h = jnp.maximum(pooled @ w0t + b0_row, 0.0)
    z = h @ w1t + b1_row
    s = jnp.minimum(jnp.maximum(z + 3.0, 0.0), 6.0) * (1.0 / 6.0)        # (B, Cp) f32
    s3 = s.reshape(B, C_pad, 1)

    # Spatial tile: largest multiple of 128 dividing HW_pad that fits the budget.
    cands = [t for t in range(128, HW_pad + 1, 128)
             if HW_pad % t == 0 and C_pad * t * itemsize <= budget_bytes]
    THW = max(cands) if cands else 128

    grid = (B, HW_pad // THW)
    cost = pl.CostEstimate(
        flops=int(B * C_pad * HW_pad),
        transcendentals=0,
        bytes_accessed=int(2 * B * C_pad * HW_pad * itemsize),
    )
    return pl.pallas_call(
        _gate_kernel,
        out_shape=jax.ShapeDtypeStruct((B, C_pad, HW_pad), x_pad.dtype),
        grid_spec=pltpu.PrefetchScalarGridSpec(
            num_scalar_prefetch=0,
            grid=grid,
            in_specs=[
                pl.BlockSpec((1, C_pad, THW), lambda b, h: (b, 0, h)),   # x tile
                pl.BlockSpec((1, C_pad, 1), lambda b, h: (b, 0, 0)),     # gate
            ],
            out_specs=pl.BlockSpec((1, C_pad, THW), lambda b, h: (b, 0, h)),
        ),
        compiler_params=pltpu.CompilerParams(
            dimension_semantics=("parallel", "parallel"),
            vmem_limit_bytes=vmem_limit,
        ),
        cost_estimate=cost,
    )(x_pad, s3)


# -------------------------------- wrapper ------------------------------------


def squeeze_excite(x, w0, b0, w1, b1, *, budget_bytes=None):
    """Squeeze_excite forward.

    x: (B, C, H, W); w0: (C//r, C); b0: (C//r,); w1: (C, C//r); b1: (C,).
    """
    B, C, H, W = x.shape
    Cr = w0.shape[0]
    HW = H * W
    itemsize = jnp.dtype(x.dtype).itemsize

    auto_budget, vmem_limit = _vmem_budgets()
    if budget_bytes is None:
        budget_bytes = auto_budget

    # Lane-dense spatial axis and sublane-packed channel axis.
    HW_pad = _round_up(HW, 128)
    c_pack = max(8, 32 // itemsize)          # f32: 8, bf16: 16, int8/fp8: 32 sublanes
    C_pad = _round_up(C, c_pack)

    x_flat = x.reshape(B, C, HW)
    if C_pad != C or HW_pad != HW:
        x_pad = jnp.pad(x_flat, ((0, 0), (0, C_pad - C), (0, HW_pad - HW)))
    else:
        x_pad = x_flat

    # Lane-dense, f32, zero-padded weight/bias layouts (padded channels
    # contribute nothing: zero rows/cols and zero bias entries).
    w0t = jnp.pad(w0.T.astype(jnp.float32), ((0, C_pad - C), (0, 0)))    # (Cp, Cr)
    w1t = jnp.pad(w1.T.astype(jnp.float32), ((0, 0), (0, C_pad - C)))    # (Cr, Cp)
    b0_row = b0.astype(jnp.float32).reshape(1, Cr)
    b1_row = jnp.pad(b1.astype(jnp.float32), (0, C_pad - C)).reshape(1, C_pad)

    bytes_per_batch = C_pad * HW_pad * itemsize
    TB = _pick_batch_tile(B, bytes_per_batch, budget_bytes)

    if TB is not None:
        out_pad = _se_fused(x_pad, w0t, b0_row, w1t, b1_row,
                            TB=TB, hw_true=HW, vmem_limit=vmem_limit)
    else:
        out_pad = _se_split(x_flat, x_pad, w0t, b0_row, w1t, b1_row,
                            budget_bytes=budget_bytes, vmem_limit=vmem_limit)

    out = out_pad[:, :C, :HW] if (C_pad != C or HW_pad != HW) else out_pad
    return out.reshape(B, C, H, W)


# ------------------------------- reference -----------------------------------


def _reference(x, w0, b0, w1, b1):
    pooled = jnp.mean(x.astype(jnp.float32), axis=(2, 3), keepdims=True)      # (B,C,1,1)
    h = jnp.einsum("oc,bcij->boij", w0.astype(jnp.float32), pooled) + b0[None, :, None, None]
    h = jnp.maximum(h, 0.0)
    z = jnp.einsum("oc,bcij->boij", w1.astype(jnp.float32), h) + b1[None, :, None, None]
    s = jnp.minimum(jnp.maximum(z + 3.0, 0.0), 6.0) / 6.0
    return (s * x.astype(jnp.float32)).astype(x.dtype)


if __name__ == "__main__":
    key = jax.random.PRNGKey(0)

    def make(B, C, H, W, r, k):
        Cr = C // r
        kx, kw0, kb0, kw1, kb1 = jax.random.split(k, 5)
        x = jax.random.normal(kx, (B, C, H, W), dtype=jnp.float32)
        w0 = jax.random.normal(kw0, (Cr, C), dtype=jnp.float32) * 0.1
        b0 = jax.random.normal(kb0, (Cr,), dtype=jnp.float32) * 0.1
        w1 = jax.random.normal(kw1, (C, Cr), dtype=jnp.float32) * 0.1
        b1 = jax.random.normal(kb1, (C,), dtype=jnp.float32) * 0.1
        return x, w0, b0, w1, b1

    k1, k2, k3 = jax.random.split(key, 3)

    # Case 1: Squeeze_excite(num_channels=8, r=4), 16x16 spatial (HW=256, already
    # lane-dense). Fused path, grid=(2,) -> pipelined / megacore-shardable.
    args = make(2, 8, 16, 16, 4, k1)
    out = jax.block_until_ready(squeeze_excite(*args))
    assert out.shape == args[0].shape
    assert jnp.allclose(out, _reference(*args), atol=1e-5, rtol=1e-5), "case 1 mismatch"

    # Case 2: realistic SE resolution 7x7 (HW=49 -> zero-padded to 128 lanes);
    # checks that the pooled mean still divides by the true H*W.
    args = make(2, 8, 7, 7, 4, k2)
    out = jax.block_until_ready(squeeze_excite(*args))
    assert jnp.allclose(out, _reference(*args), atol=1e-5, rtol=1e-5), "case 2 mismatch"

    # Case 3: force the spatial-tiled fallback path with a tiny per-buffer budget
    # (simulates a single batch element exceeding VMEM).
    args = make(2, 8, 16, 16, 4, k3)
    out = jax.block_until_ready(squeeze_excite(*args, budget_bytes=4096))
    assert jnp.allclose(out, _reference(*args), atol=1e-5, rtol=1e-5), "case 3 mismatch"

    print("KERNEL_OK")
</pallas_src>

<mosaic_0001>
module attributes {stable_mosaic.version = 11 : i64} {
  func.func @_se_kernel(%arg0: i32, %arg1: memref<1x8x256xf32, #tpu.memory_space<vmem>>, %arg2: memref<8x2xf32, #tpu.memory_space<vmem>>, %arg3: memref<1x2xf32, #tpu.memory_space<vmem>>, %arg4: memref<2x8xf32, #tpu.memory_space<vmem>>, %arg5: memref<1x8xf32, #tpu.memory_space<vmem>>, %arg6: memref<1x8x256xf32, #tpu.memory_space<vmem>>) attributes {dimension_semantics = [#tpu.dimension_semantics<parallel>], iteration_bounds = array<i64: 2>, scalar_prefetch = 0 : i64, scratch_operands = 0 : i64, tpu.core_type = #tpu.core_type<tc>, window_params = [{transform_indices = @transform_0, window_bounds = array<i64: 1, 8, 256>}, {pipeline_mode = #tpu.pipeline_mode<synchronous>, transform_indices = @transform_1, window_bounds = array<i64: 8, 2>}, {pipeline_mode = #tpu.pipeline_mode<synchronous>, transform_indices = @transform_2, window_bounds = array<i64: 1, 2>}, {pipeline_mode = #tpu.pipeline_mode<synchronous>, transform_indices = @transform_3, window_bounds = array<i64: 2, 8>}, {pipeline_mode = #tpu.pipeline_mode<synchronous>, transform_indices = @transform_4, window_bounds = array<i64: 1, 8>}, {transform_indices = @transform_5, window_bounds = array<i64: 1, 8, 256>}]} {
    %c0 = arith.constant 0 : index
    %c0_0 = arith.constant 0 : index
    %c0_1 = arith.constant 0 : index
    %0 = vector.load %arg1[%c0, %c0_0, %c0_1] : memref<1x8x256xf32, #tpu.memory_space<vmem>>, vector<1x8x256xf32>
    %cst = arith.constant dense<0.000000e+00> : vector<1x8xf32>
    %1 = vector.multi_reduction <add>, %0, %cst [2] : vector<1x8x256xf32> to vector<1x8xf32>
    %cst_2 = arith.constant 3.906250e-03 : f32
    %2 = vector.broadcast %cst_2 : f32 to vector<1x8xf32>
    %3 = arith.mulf %1, %2 : vector<1x8xf32>
    %c0_3 = arith.constant 0 : index
    %c0_4 = arith.constant 0 : index
    %4 = vector.load %arg2[%c0_3, %c0_4] : memref<8x2xf32, #tpu.memory_space<vmem>>, vector<8x2xf32>
    %cst_5 = arith.constant dense<0.000000e+00> : vector<1x2xf32>
    %5 = tpu.matmul %3, %4, %cst_5 {dimension_numbers = #tpu.dot_dimension_numbers<[1], [0], [0], [1], [0, 0, 1, 1], [], []>} : vector<1x8xf32>, vector<8x2xf32>, vector<1x2xf32> -> vector<1x2xf32>
    %c0_6 = arith.constant 0 : index
    %c0_7 = arith.constant 0 : index
    %6 = vector.load %arg3[%c0_6, %c0_7] : memref<1x2xf32, #tpu.memory_space<vmem>>, vector<1x2xf32>
    %7 = arith.addf %5, %6 : vector<1x2xf32>
    %cst_8 = arith.constant 0.000000e+00 : f32
    %8 = vector.broadcast %cst_8 : f32 to vector<1x2xf32>
    %9 = arith.maximumf %7, %8 : vector<1x2xf32>
    %c0_9 = arith.constant 0 : index
    %c0_10 = arith.constant 0 : index
    %10 = vector.load %arg4[%c0_9, %c0_10] : memref<2x8xf32, #tpu.memory_space<vmem>>, vector<2x8xf32>
    %cst_11 = arith.constant dense<0.000000e+00> : vector<1x8xf32>
    %11 = tpu.matmul %9, %10, %cst_11 {dimension_numbers = #tpu.dot_dimension_numbers<[1], [0], [0], [1], [0, 0, 1, 1], [], []>} : vector<1x2xf32>, vector<2x8xf32>, vector<1x8xf32> -> vector<1x8xf32>
    %c0_12 = arith.constant 0 : index
    %c0_13 = arith.constant 0 : index
    %12 = vector.load %arg5[%c0_12, %c0_13] : memref<1x8xf32, #tpu.memory_space<vmem>>, vector<1x8xf32>
    %13 = arith.addf %11, %12 : vector<1x8xf32>
    %cst_14 = arith.constant 3.000000e+00 : f32
    %14 = vector.broadcast %cst_14 : f32 to vector<1x8xf32>
    %15 = arith.addf %13, %14 : vector<1x8xf32>
    %cst_15 = arith.constant 0.000000e+00 : f32
    %16 = vector.broadcast %cst_15 : f32 to vector<1x8xf32>
    %17 = arith.maximumf %15, %16 : vector<1x8xf32>
    %cst_16 = arith.constant 6.000000e+00 : f32
    %18 = vector.broadcast %cst_16 : f32 to vector<1x8xf32>
    %19 = arith.minimumf %17, %18 : vector<1x8xf32>
    %cst_17 = arith.constant 0.166666672 : f32
    %20 = vector.broadcast %cst_17 : f32 to vector<1x8xf32>
    %21 = arith.mulf %19, %20 : vector<1x8xf32>
    %22 = vector.shape_cast %21 : vector<1x8xf32> to vector<1x8x1xf32>
    %23 = vector.broadcast %22 : vector<1x8x1xf32> to vector<1x8x256xf32>
    %24 = arith.mulf %0, %23 : vector<1x8x256xf32>
    %c0_18 = arith.constant 0 : index
    %c0_19 = arith.constant 0 : index
    %c0_20 = arith.constant 0 : index
    %25 = vector.load %arg6[%c0_18, %c0_19, %c0_20] : memref<1x8x256xf32, #tpu.memory_space<vmem>>, vector<1x8x256xf32>
    tpu.vector_store %arg6[%c0_18, %c0_19, %c0_20], %24 {strides = array<i32>} : memref<1x8x256xf32, #tpu.memory_space<vmem>>, vector<1x8x256xf32>,
    return
  }
  func.func @transform_0(%arg0: i32) -> (i32, i32, i32) {
    %c0_i32 = arith.constant 0 : i32
    %c0_i32_0 = arith.constant 0 : i32
    %c0_i32_1 = arith.constant 0 : i32
    return %arg0, %c0_i32, %c0_i32_0 : i32, i32, i32
  }
  func.func @transform_1(%arg0: i32) -> (i32, i32) {
    %c0_i32 = arith.constant 0 : i32
    %c0_i32_0 = arith.constant 0 : i32
    %c0_i32_1 = arith.constant 0 : i32
    return %c0_i32, %c0_i32_0 : i32, i32
  }
  func.func @transform_2(%arg0: i32) -> (i32, i32) {
    %c0_i32 = arith.constant 0 : i32
    %c0_i32_0 = arith.constant 0 : i32
    %c0_i32_1 = arith.constant 0 : i32
    return %c0_i32, %c0_i32_0 : i32, i32
  }
  func.func @transform_3(%arg0: i32) -> (i32, i32) {
    %c0_i32 = arith.constant 0 : i32
    %c0_i32_0 = arith.constant 0 : i32
    %c0_i32_1 = arith.constant 0 : i32
    return %c0_i32, %c0_i32_0 : i32, i32
  }
  func.func @transform_4(%arg0: i32) -> (i32, i32) {
    %c0_i32 = arith.constant 0 : i32
    %c0_i32_0 = arith.constant 0 : i32
    %c0_i32_1 = arith.constant 0 : i32
    return %c0_i32, %c0_i32_0 : i32, i32
  }
  func.func @transform_5(%arg0: i32) -> (i32, i32, i32) {
    %c0_i32 = arith.constant 0 : i32
    %c0_i32_0 = arith.constant 0 : i32
    %c0_i32_1 = arith.constant 0 : i32
    return %arg0, %c0_i32, %c0_i32_0 : i32, i32, i32
  }
}

</mosaic_0001>

<bundles_post_ra>
// kernel: tpu_custom_call.1
= control target key start
LH: loop header
LB: loop body
LE: loop exit
PB: predicated region body
PF: predicated region fallthrough
CT: control target
= control target key end

     0   :  { %10 = vsyncpa [#allocation3], 0  ;;  %s900_s0 = inlined_call_operand.hbm [shape: f32[2,8,256], index: 0, kind: input, shape index: {}]   ;;  %s901_s1 = inlined_call_operand.vmem [shape: f32[8,2], index: 1, kind: input, shape index: {}]   ;;  %s902_s2 = inlined_call_operand.vmem [shape: f32[1,2], index: 2, kind: input, shape index: {}]   ;;  %s903_s3 = inlined_call_operand.vmem [shape: f32[2,8], index: 3, kind: input, shape index: {}]   ;;  %s904_s4 = inlined_call_operand.vmem [shape: f32[1,8], index: 4, kind: input, shape index: {}]   ;;  %s905_s5 = inlined_call_operand.hbm [shape: f32[2,8,256], index: 5, kind: output, shape index: {}]  }
   0x1   :  { %12 = vsyncpa [#allocation3 + $0x1], 0 }
   0x2   :  { %13 = vsyncpa [#allocation4], 0 }
   0x3   :  { %15 = vsyncpa [#allocation4 + $0x1], 0  ;;  %s723_s18 = smov 0   ;;  %s725_s19 = smov 0  }
   0x4   :  { %s727_s20 = smov 0   ;;  %s729_s21 = smov 0  }
   0x5 LB: > { %s744_s22 = sadd.s32 4294967295, %s687_s21   ;;  %s510_s23 = sadd.s32 4294967294, %s687_s21   ;;  %s687_s21 = sphi %s729_s21, %s920_s21   ;;  %s683_s20 = sphi %s727_s20, %s919_s20   ;;  %s679_s19 = sphi %s725_s19, %s918_s19   ;;  %s675_s18 = sphi %s723_s18, %s917_s18  }
   0x6   : > { %s748_s24 = sadd.s32 1, %s687_s21   ;;  %s28_s25 = sadd.s32 1, %s683_s20 }
   0x7   : > { %s25_s26 = ssub.s32 %s687_s21, %s748_s24  ;;  %p35_p0 = scmp.ne.s32.totalorder %s683_s20, %s679_s19 }
   0x8   : > { %p26_p1 = scmp.eq.s32.totalorder %s25_s26, 0  ;;  %p36_p2 = scmp.eq.s32.totalorder %s687_s21, 0 }
   0x9   : > { %p41_p3 = scmp.ne.s32.totalorder %s679_s19, %s675_s18  ;;  %p42_p4 = scmp.eq.s32.totalorder %s744_s22, 0 }
   0xa   : > { %s760_s27 = scalar_select %p26_p1, %s683_s20, %s28_s25  }
   0xb   : > { %p762_p5 = por %p36_p2, %p35_p0  ;;  %p766_p6 = por %p42_p4, %p41_p3 }
   0xc   : > { %p149_p7 = scmp.eq.s32.totalorder %s744_s22, 1  ;;  %p155_p8 = scmp.eq.s32.totalorder %s510_s23, 1 }
   0xd   : > { %p555_p10 = scmp.lt.s32.totalorder %s687_s21, 2  ;;  %s187_s7 = sand.u32 1, %s683_s20  }
   0xe   : > { %p773_p11 = por %p149_p7, %p35_p0  ;;  %p777_p12 = por %p155_p8, %p41_p3 }
   0xf   : > { %s527_s8 = sshll.u32 %s687_s21, 8  ;;  %s513_s9 = sshll.u32 %s187_s7, 4 }
  0x10   : > { %s909_s30 = scalar_select %p773_p11, 1, 0 }
  0x11   : > { %s910_s6 = scalar_select %p777_p12, 1, 0 }
  0x12   : > { %s786_s12 = scalar_lea.hbm %s900_s0, %s527_s8  ;;  %s191_s13 = scalar_lea.vmem [#allocation2], %s513_s9 }
  0x13   : > { %s199_s14 = sshll.u32 %s191_s13, 4  ;;  %p790_p13 = pnand %p555_p10, %p762_p5  ;;  %s794_s14 = int_to_ptr.vmem [resolvable:$true] %s199_s14 }
  0x14   : > { %s188_s16 = scalar_lea.sflag [#allocation3], %s187_s7  ;;  %s591_s17 = scalar_lea.hbm %s786_s12, 256 }
  0x15   : > { %p592_p2 = scmp.ne.s32.totalorder %s786_s12, %s591_s17  ;;  %p593_p3 = pneg %p790_p13 }
  0x16   : > { %s596_s26 = scalar_lea.hbm %s900_s0, 512  ;;  %p597_p5 = scmp.lt.u32.totalorder %s786_s12, %s900_s0 }
  0x17   : > { %p594_p4 = pnand %p593_p3, %p592_p2  ;;  %p598_p8 = scmp.lt.u32.totalorder %s596_s26, %s591_s17 }
  0x18   : > { %p600_p9 = scmp.lt.u32.totalorder %s591_s17, %s786_s12 }
  0x19   : > { %p595_p7 = pneg %p594_p4  ;;  %p599_p10 = por %p598_p8, %p597_p5 }
  0x1b   : > { %p601_p0 = por %p600_p9, %p599_p10 }
  0x1d   : > { %p602_p1 = pnand %p601_p0, %p595_p7 }
  0x1f   : > { %605 = shalt.err (!%p602_p1)
}
  0x20   : > { %s606_s7 = scalar_lea.vmem %s794_s14, 256  ;;  %s689_s9 = smov [#allocation2]  }
  0x21   : > { %p607_p2 = scmp.ne.s32.totalorder %s794_s14, %s606_s7  ;;  %s611_s10 = sshll.u32 %s689_s9, 4  ;;  %s612_s10 = int_to_ptr.vmem [resolvable:$false] %s611_s10 }
  0x22   : > { %s613_s11 = scalar_lea.vmem %s612_s10, 512  ;;  %p614_p11 = scmp.lt.s32.totalorder %s794_s14, %s612_s10 }
  0x23   : > { %p609_p4 = pnand %p607_p2, %p593_p3  ;;  %p615_p5 = scmp.lt.s32.totalorder %s613_s11, %s606_s7 }
  0x25   : > { %p610_p12 = pneg %p609_p4  ;;  %p616_p8 = por %p615_p5, %p614_p11 }
  0x27   : > { %p617_p9 = pnand %p616_p8, %p610_p12 }
  0x29   : > { %620 = shalt.err (!%p617_p9)
}
  0x2a   : > { %550 = dma.hbm_to_vmem [thread:$0]  (!%p790_p13), %s786_s12, 256, %s794_s14, %s188_s16  }
  0x2b   : > { %p912_p0 = scmp.lt.s32.totalorder %s687_s21, 3  ;;  %p913_p1 = scmp.ge.s32.totalorder %s687_s21, 1 }
  0x2d   : > { %p205_p3 = pnand %p913_p1, %p912_p0 }
  0x2e   : > { %s828_s13 = sand.u32 (!%p205_p3), 1, %s679_s19  }
  0x2f   : > { %208 = sbr.rel (%p205_p3) target bundleno = 775 (0x307), region = 40  ;;  %s517_s17 = sshll.u32 (!%p205_p3), %s828_s13, 4 }
  0x30   : > { %s211_s23 = scalar_lea.sflag (!%p205_p3), [#allocation3], %s828_s13  ;;  %s214_s15 = scalar_lea.vmem (!%p205_p3), [#allocation2], %s517_s17 }
  0x36   : > { %666 = dma.done.wait (%p766_p6), %s211_s23, 256  }
  0x37   : > { %668 = vsyncadd (%p766_p6), %s211_s23, 4294967040  ;;  %v241_v0 = vld [vmem:[%s214_s15] sm:$0xff]  ;;  %v242_v1 = vld [vmem:[%s214_s15 + $0x8] sm:$0xff]  ;;  %v690_v3 = vmov 0.0   ;;  %vm691_vm0 = vmmov 0   ;;  %v250_v5 = vlaneseq  ;;  %vm256_vm1 = vcmask 64512  }
  0x38   : > { %v243_v2 = vadd.f32 %v242_v1, %v241_v0  ;;  %533 = vmatprep.subr.mxu0 %v690_v3  ;;  %v247_v4 = vld [vmem:[%s901_s1] sm:$0xff]  ;;  %538 = vmatprep.subr.mxu1 %v690_v3  ;;  %vm336_vm2 = vcmask 1041408   ;;  %vm332_vm3 = vcmask 15360   ;;  %s528_s7 = sshll.u32 %s744_s22, 8  ;;  %s240_s9 = scalar_lea.vmem [#allocation5], %s517_s17 }
  0x39   : > { %534 = vmatpush3.msra.mxu0 %v247_v4  ;;  %535 = vmatprep.mubr.msk.f32.mxu0 %vm691_vm0, %v690_v3  ;;  %v251_v6 = vand.u32 127, %v250_v5  ;;  %v253_v7 = vshrl.u32 %v250_v5, 7  ;;  %v330_v12 = vld [vmem:[%s903_s3] sm:$0x3]  ;;  %s440_s10 = sshll.u32 %s240_s9, 4  ;;  %s856_s15 = scalar_lea.hbm %s905_s5, %s528_s7  ;;  %s858_s10 = int_to_ptr.vmem [resolvable:$true] %s440_s10 }
  0x3a   : > { %244 = vadd.xlane.f32.xlu0 %v243_v2  ;;  %540 = vmatprep.mubr.msk.f32.mxu1 %vm691_vm0, %v690_v3  ;;  %v248_v13 = vld [vmem:[%s902_s2] sm:$0x1]  ;;  %s426_s12 = scalar_lea.sflag [#allocation4], %s828_s13  ;;  %s621_s22 = scalar_lea.vmem %s858_s10, 256 }
  0x3b   : > { %v254_v8 = vsub.s32 %v251_v6, %v253_v7  ;;  %539 = vmatpush3.msk.msra.mxu1 %vm336_vm2, %v330_v12  ;;  %v331_v18 = vld [vmem:[%s904_s4] sm:$0x1]  ;;  %v416_v25 = vsub.s32 0, %v253_v7  ;;  %p622_p6 = scmp.ne.s32.totalorder %s858_s10, %s621_s22  ;;  %p914_p11 = scmp.ne.s32.totalorder %s909_s30, 0 }
  0x3c   : > { %s692_s17 = smov [#allocation5]  }
  0x3d   : > { %p623_p12 = pnand %p622_p6, %p914_p11  ;;  %s625_s14 = sshll.u32 %s692_s17, 4  ;;  %s626_s14 = int_to_ptr.vmem [resolvable:$false] %s625_s14 }
  0x3e   : > { %s627_s29 = scalar_lea.vmem %s626_s14, 512  ;;  %p628_p7 = scmp.lt.s32.totalorder %s858_s10, %s626_s14 }
  0x3f   : > { %p624_p13 = pneg %p623_p12  ;;  %p629_p10 = scmp.lt.s32.totalorder %s627_s29, %s621_s22 }
  0x41   : > { %p630_p2 = por %p629_p10, %p628_p7 }
  0x43   : > { %p631_p4 = pnand %p630_p2, %p624_p13 }
  0xc7   : > { %v245_v9 = vpop.xlane.xlu0 %244 }
  0xc8   : > { %v246_v10 = vmul.f32 0.00390625, %v245_v9 }
  0xca   : > { %v255_v11 = vrot.slane %v246_v10, %v254_v8 }
  0xcc   : > { %536 = vmatmul.mubr.msk.f32.vlgmr.msra.gmra.mrb[0].mxu0 %vm256_vm1, %v255_v11 }
 0x19f   : > { %v325_v14 = vpop.f32.mrb[0].mxu0 }
 0x1a0   : > { %v326_v15 = vadd.f32 %v325_v14, %v248_v13  ;;  %v537_v16 = vpop.f32.mrb[1].mxu0 }
 0x1a2   : > { %v329_v17 = vmax.f32 %v326_v15, 0.0 }
 0x1a4   : > { %541 = vmatmul.mubr.msk.f32.vlgmr.msra.gmra.mrb[0].mxu1 %vm332_vm3, %v329_v17 }
 0x277   : > { %v406_v19 = vpop.f32.mrb[0].mxu1 }
 0x278   : > { %v407_v20 = vadd.f32 %v406_v19, %v331_v18  ;;  %v542_v21 = vpop.f32.mrb[1].mxu1 }
 0x27a   : > { %v410_v22 = vadd.f32 3.0, %v407_v20 }
 0x27c   : > { %v411_v23 = vmax.f32 %v410_v22, 0.0 }
 0x27e   : > { %v412_v24 = vmin.f32 %v411_v23, 6.0 }
 0x280   : > { %v413_v26 = vmul.f32 0.16666667, %v412_v24 }
 0x282   : > { %v417_v27 = vrot.slane %v413_v26, %v416_v25 }
 0x284   : > { %419 = vbcast.lane.b32.xlu0 %v417_v27, 256 }
 0x2f6   : > { %v420_v28 = vpop.permute.xlu0 %419 }
 0x2f7   : > { %v421_v29 = vmul.f32 %v420_v28, %v241_v0  ;;  %v422_v30 = vmul.f32 %v420_v28, %v242_v1 }
 0x2f9   : > { %423 = vst [vmem:[%s240_s9] sm:$0xff] %v421_v29  ;;  %424 = vst [vmem:[%s240_s9 + $0x8] sm:$0xff] %v422_v30 }
 0x2fa   : > { %634 = shalt.err (!%p631_p4)
}
 0x2fb   : > { %s635_s13 = scalar_lea.hbm %s856_s15, 256  ;;  %s639_s26 = scalar_lea.hbm %s905_s5, 512 }
 0x2fc   : > { %p636_p5 = scmp.ne.s32.totalorder %s856_s15, %s635_s13  ;;  %p640_p0 = scmp.lt.u32.totalorder %s856_s15, %s905_s5 }
 0x2fd   : > { %p641_p1 = scmp.lt.u32.totalorder %s639_s26, %s635_s13  ;;  %p643_p6 = scmp.lt.u32.totalorder %s635_s13, %s856_s15 }
 0x2fe   : > { %p637_p8 = pnand %p636_p5, %p914_p11 }
 0x2ff   : > { %p642_p3 = por %p641_p1, %p640_p0 }
 0x300   : > { %p638_p9 = pneg %p637_p8 }
 0x301   : > { %p644_p12 = por %p643_p6, %p642_p3 }
 0x303   : > { %p645_p13 = pnand %p644_p12, %p638_p9 }
 0x305   : > { %648 = shalt.err (!%p645_p13)
}
 0x306   : > { %545 = dma.vmem_to_hbm [thread:$0]  (%p914_p11), %s858_s10, 256, %s856_s15, %s426_s12  }
 0x307 PF: > { %s452_s7 = sand.u32 1, %s675_s18   ;;  %p915_p7 = scmp.ne.s32.totalorder %s910_s6, 0 }
 0x308   : > { %p916_p10 = scmp.ge.s32.totalorder %s687_s21, 2  ;;  %s453_s9 = scalar_lea.sflag [#allocation4], %s452_s7 }
 0x30a   : > { %p552_p2 = pnand %p916_p10, %p915_p7 }
 0x30c   : > { %670 = dma.done.wait (!%p552_p2), %s453_s9, 256  }
 0x30d   : > { %672 = vsyncadd (!%p552_p2), %s453_s9, 4294967040  ;;  %p18_p4 = scmp.ge.s32.totalorder %s748_s24, 4   ;;  %s917_s18 = smov %s679_s19 }
 0x30e   : > { %s918_s19 = smov %s683_s20  ;;  %s919_s20 = smov %s760_s27 }
 0x30f   : > { %s920_s21 = smov %s748_s24  ;;  %20 = sbr.rel (!%p18_p4) target bundleno = 5 (0x5), region = 85 }
 0x316   :  { %458 = vsyncpa [#allocation3], 1 }
 0x317   :  { %460 = vsyncpa [#allocation3 + $0x1], 1 }
 0x318   :  { %461 = vsyncpa [#allocation4], 1 }
 0x319   :  { %463 = vsyncpa [#allocation4 + $0x1], 1 }

</bundles_post_ra>
